<compile_context>
chip_gen: v6e
topology: v6e:2x2x1
jax: 0.10.0
libtpu: 0.0.40
codegen_flags: <defaults>
</compile_context>

<pallas_src>
import jax
import jax.numpy as jnp
from jax import lax
from jax.experimental import pallas as pl
from jax.experimental.pallas import tpu as pltpu

MIN_VALUE = 1e-10


def _relu(v):
    return jnp.maximum(v, 0.0)


def _concat_kernel(alpha_ref, b3_ref, adj_ref, x_ref,
                   wpre_ref, bpre_ref, w1_ref, b1_ref, w2_ref, b2_ref,
                   w3g_ref, w3f_ref, out_ref):
    """One grid step == one batch tile of TB samples, processed together."""
    TB, N, _ = adj_ref.shape
    L2 = w2_ref.shape[1]

    alpha = alpha_ref[0, 0]            # SMEM scalar (already clamped in wrapper)
    adj = adj_ref[...]                 # (TB, N, N), N on the lane axis

    # ---- normalized adjacency applied to ones -------------------------------
    # (alpha*I + D^{-1/2} A D^{-1/2}) @ 1  ==  alpha + dinv * (A @ dinv)
    rowsum = jnp.sum(adj, axis=2, keepdims=True)            # (TB, N, 1)  lane reduce
    deg = jnp.where(rowsum != 0.0, rowsum, 1.0)
    dinv = lax.rsqrt(deg)                                    # (TB, N, 1)  EUP
    # Single batched matvec for the whole tile (one MXU op, amortized).
    av = jnp.einsum('bnm,bmk->bnk', adj, dinv,
                    preferred_element_type=jnp.float32)      # (TB, N, 1)
    gcn_pre = alpha + dinv * av                              # (TB, N, 1)

    # ---- gcn_layer: Linear(1, P) + ReLU, fused with the gcn half of fc3 -----
    gcn_h = _relu(gcn_pre * wpre_ref[...][None] + bpre_ref[...][None])      # (TB, N, P)
    gcn_node = jnp.sum(gcn_h * w3g_ref[...][None], axis=2, keepdims=True)   # (TB, N, 1)

    # ---- classifier: Linear(1,L1)+ReLU+Dropout(eval: id)+Linear(L1,L2)+ReLU -
    xcol = x_ref[...]                                        # (TB*N, 1) node-major
    h1 = _relu(xcol * w1_ref[...] + b1_ref[...])             # (TB*N, L1)  2-D broadcast
    h2 = _relu(jnp.dot(h1, w2_ref[...],
                       preferred_element_type=jnp.float32) + b2_ref[...])   # (TB*N, L2)
    # N is a multiple of the 8-sublane tile, so this leading-dim split is a
    # layout-preserving reshape (no data movement).
    h2 = h2.reshape(TB, N, L2)
    fc_node = jnp.sum(h2 * w3f_ref[...][None], axis=2, keepdims=True)       # (TB, N, 1)

    # ---- fc3 (num_classes == 1): sum node contributions, add bias -----------
    total = jnp.sum(gcn_node + fc_node, axis=1)              # (TB, 1)
    # Single full-block store at the end of the step (no per-sample stores).
    out_ref[...] = total + b3_ref[0, 0]


def _pick_batch_tile(B, N, vmem_budget_bytes=8 << 20):
    """Largest batch tile whose double-buffered adjacency block fits a
    conservative VMEM budget (safe on v7x's 64 MiB VMEM) and keeps the output
    block legal (tile == B, or a multiple of the 8-sublane tile)."""
    max_tb = max(1, vmem_budget_bytes // (2 * N * N * 4))
    if B <= max_tb:
        return B
    for t in range(min(B, max_tb), 0, -1):
        if B % t == 0 and (t == B or t % 8 == 0):
            return t
    return B


def concat_values_and_graph_structure(x, adj, params, *, batch_tile=None):
    B, N, _ = x.shape
    P = params["w_pre"].shape[1]
    L1 = params["w1"].shape[1]
    L2 = params["w2"].shape[1]
    assert N % 8 == 0, "kernel assumes node count is a multiple of the 8-sublane tile"

    tb = _pick_batch_tile(B, N) if batch_tile is None else batch_tile
    assert B % tb == 0

    alpha_eff = jnp.where(params["alpha"] < MIN_VALUE,
                          jnp.float32(MIN_VALUE), params["alpha"]).astype(jnp.float32)
    b3 = params["b3"].astype(jnp.float32)                    # (1, 1)
    x2d = x.reshape(B * N, 1).astype(jnp.float32)            # node-major column
    adj = adj.astype(jnp.float32)

    smem_spec = pl.BlockSpec(memory_space=pltpu.MemorySpace.SMEM)

    def const_spec(arr):
        nd = arr.ndim
        return pl.BlockSpec(arr.shape, lambda i, _nd=nd: (0,) * _nd)

    in_specs = [
        smem_spec,                                           # alpha  (1,1) -> SMEM
        smem_spec,                                           # b3     (1,1) -> SMEM
        pl.BlockSpec((tb, N, N), lambda i: (i, 0, 0)),       # adjacency tile
        pl.BlockSpec((tb * N, 1), lambda i: (i, 0)),         # x, node-major
        const_spec(params["w_pre"]), const_spec(params["b_pre"]),
        const_spec(params["w1"]), const_spec(params["b1"]),
        const_spec(params["w2"]), const_spec(params["b2"]),
        const_spec(params["w3_gcn"]), const_spec(params["w3_fc"]),
    ]
    out_specs = pl.BlockSpec((tb, 1), lambda i: (i, 0))

    flops = int(B * (4 * N * N + 5 * N * P + 3 * N * L1 + 2 * N * L1 * L2 + 5 * N * L2))
    param_bytes = 4 * sum(int(params[k].size) for k in
                          ("w_pre", "b_pre", "w1", "b1", "w2", "b2",
                           "w3_gcn", "w3_fc", "b3"))
    bytes_accessed = int(4 * (adj.size + x.size + B + 1) + param_bytes)

    out = pl.pallas_call(
        _concat_kernel,
        grid=(B // tb,),
        in_specs=in_specs,
        out_specs=out_specs,
        out_shape=jax.ShapeDtypeStruct((B, 1), jnp.float32),
        compiler_params=pltpu.CompilerParams(
            dimension_semantics=("parallel",)),                 # v7x: shard tiles over 2 TCs
        cost_estimate=pl.CostEstimate(flops=flops,
                                      transcendentals=int(B * N),
                                      bytes_accessed=bytes_accessed),
    )(alpha_eff, b3, adj, x2d,
      params["w_pre"], params["b_pre"], params["w1"], params["b1"],
      params["w2"], params["b2"], params["w3_gcn"], params["w3_fc"])
    return out


def init_params(key, N, P, L1, L2, num_classes=1):
    assert num_classes == 1  # kernel handles the default num_classes=1
    ks = jax.random.split(key, 4)

    def linear(k, fan_in, fan_out):
        bound = 1.0 / (fan_in ** 0.5)
        kw, kb = jax.random.split(k)
        w = jax.random.uniform(kw, (fan_in, fan_out), jnp.float32, -bound, bound)
        b = jax.random.uniform(kb, (1, fan_out), jnp.float32, -bound, bound)
        return w, b

    w_pre, b_pre = linear(ks[0], 1, P)          # nn.Linear(1, preweight)
    w1, b1 = linear(ks[1], 1, L1)               # nn.Linear(1, layer_1)
    w2, b2 = linear(ks[2], L1, L2)              # nn.Linear(layer_1, layer_2)

    F = N * P + N * L2
    w3, b3 = linear(ks[3], F, num_classes)      # nn.Linear(F, num_classes)
    w3_row = w3.T                               # torch layout (num_classes, F)
    w3_gcn = w3_row[0, :N * P].reshape(N, P)    # matches flatten(gcn) ordering
    w3_fc = w3_row[0, N * P:].reshape(N, L2)    # matches flatten(fc)  ordering
    b3 = b3.reshape(1, 1)

    return dict(w_pre=w_pre, b_pre=b_pre, w1=w1, b1=b1, w2=w2, b2=b2,
                w3_gcn=w3_gcn, w3_fc=w3_fc, b3=b3)


def reference_forward(x, adj, params):
    """Pure-JAX transcription of the PyTorch forward (eval mode)."""
    B, N, _ = x.shape
    alpha_eff = jnp.where(params["alpha"] < MIN_VALUE, MIN_VALUE, params["alpha"])
    rowsum = adj.sum(axis=2)
    deg = jnp.where(rowsum != 0.0, rowsum, 1.0)
    dinv = deg ** -0.5
    d_mat = jax.vmap(jnp.diag)(dinv)                       # (B, N, N)
    a_hat = d_mat @ adj @ d_mat
    eye = jnp.eye(N, dtype=x.dtype)
    m = alpha_eff[0, 0] * eye[None] + a_hat
    gcn = m @ jnp.ones_like(x)                             # (B, N, 1)
    gcn = jax.nn.relu(gcn @ params["w_pre"] + params["b_pre"])
    gcn_flat = gcn.reshape(B, -1)
    h1 = jax.nn.relu(x @ params["w1"] + params["b1"])
    h2 = jax.nn.relu(h1 @ params["w2"] + params["b2"])     # dropout = identity (eval)
    fc_flat = h2.reshape(B, -1)
    cat = jnp.concatenate([gcn_flat, fc_flat], axis=1)
    w3_full = jnp.concatenate([params["w3_gcn"].reshape(1, -1),
                               params["w3_fc"].reshape(1, -1)], axis=1)
    return cat @ w3_full.T + params["b3"]


if __name__ == "__main__":
    B, N = 2, 8                 # batch, nodes_number
    P, L1, L2 = 4, 16, 8        # preweight, layer_1, layer_2

    key = jax.random.PRNGKey(0)
    k_adj, k_x, k_p, k_alpha = jax.random.split(key, 4)

    adj = jax.random.uniform(k_adj, (B, N, N), jnp.float32)
    adj = 0.5 * (adj + jnp.transpose(adj, (0, 2, 1)))      # symmetric graph weights
    x = jax.random.normal(k_x, (B, N, 1), jnp.float32)

    params = init_params(k_p, N, P, L1, L2)
    # alpha = 1 + N(0, 0.1) noise, drawn deterministically
    params["alpha"] = (jnp.ones((1, 1), jnp.float32)
                       + 0.1 * jax.random.normal(k_alpha, (1, 1), jnp.float32))

    out = concat_values_and_graph_structure(x, adj, params)
    out = jax.block_until_ready(out)

    ref = reference_forward(x, adj, params)
    assert out.shape == (B, 1), out.shape
    assert jnp.allclose(out, ref, atol=1e-4, rtol=1e-4), (out, ref)
    print("KERNEL_OK")
</pallas_src>

<mosaic_0001>
module attributes {stable_mosaic.version = 11 : i64} {
  func.func @_concat_kernel(%arg0: i32, %arg1: memref<1x1xf32, #tpu.memory_space<smem>>, %arg2: memref<1x1xf32, #tpu.memory_space<smem>>, %arg3: memref<2x8x8xf32, #tpu.memory_space<vmem>>, %arg4: memref<16x1xf32, #tpu.memory_space<vmem>>, %arg5: memref<1x4xf32, #tpu.memory_space<vmem>>, %arg6: memref<1x4xf32, #tpu.memory_space<vmem>>, %arg7: memref<1x16xf32, #tpu.memory_space<vmem>>, %arg8: memref<1x16xf32, #tpu.memory_space<vmem>>, %arg9: memref<16x8xf32, #tpu.memory_space<vmem>>, %arg10: memref<1x8xf32, #tpu.memory_space<vmem>>, %arg11: memref<8x4xf32, #tpu.memory_space<vmem>>, %arg12: memref<8x8xf32, #tpu.memory_space<vmem>>, %arg13: memref<2x1xf32, #tpu.memory_space<vmem>>) attributes {dimension_semantics = [#tpu.dimension_semantics<parallel>], iteration_bounds = array<i64: 1>, scalar_prefetch = 0 : i64, scratch_operands = 0 : i64, tpu.core_type = #tpu.core_type<tc>, window_params = [{transform_indices = @transform_0, window_bounds = array<i64: 1, 1>}, {transform_indices = @transform_1, window_bounds = array<i64: 1, 1>}, {transform_indices = @transform_2, window_bounds = array<i64: 2, 8, 8>}, {transform_indices = @transform_3, window_bounds = array<i64: 16, 1>}, {pipeline_mode = #tpu.pipeline_mode<synchronous>, transform_indices = @transform_4, window_bounds = array<i64: 1, 4>}, {pipeline_mode = #tpu.pipeline_mode<synchronous>, transform_indices = @transform_5, window_bounds = array<i64: 1, 4>}, {pipeline_mode = #tpu.pipeline_mode<synchronous>, transform_indices = @transform_6, window_bounds = array<i64: 1, 16>}, {pipeline_mode = #tpu.pipeline_mode<synchronous>, transform_indices = @transform_7, window_bounds = array<i64: 1, 16>}, {pipeline_mode = #tpu.pipeline_mode<synchronous>, transform_indices = @transform_8, window_bounds = array<i64: 16, 8>}, {pipeline_mode = #tpu.pipeline_mode<synchronous>, transform_indices = @transform_9, window_bounds = array<i64: 1, 8>}, {pipeline_mode = #tpu.pipeline_mode<synchronous>, transform_indices = @transform_10, window_bounds = array<i64: 8, 4>}, {pipeline_mode = #tpu.pipeline_mode<synchronous>, transform_indices = @transform_11, window_bounds = array<i64: 8, 8>}, {transform_indices = @transform_12, window_bounds = array<i64: 2, 1>}]} {
    %c0 = arith.constant 0 : index
    %c0_0 = arith.constant 0 : index
    %0 = memref.load %arg1[%c0, %c0_0] : memref<1x1xf32, #tpu.memory_space<smem>>
    %c0_1 = arith.constant 0 : index
    %c0_2 = arith.constant 0 : index
    %c0_3 = arith.constant 0 : index
    %1 = vector.load %arg3[%c0_1, %c0_2, %c0_3] : memref<2x8x8xf32, #tpu.memory_space<vmem>>, vector<2x8x8xf32>
    %cst = arith.constant dense<0.000000e+00> : vector<2x8xf32>
    %2 = vector.multi_reduction <add>, %1, %cst [2] : vector<2x8x8xf32> to vector<2x8xf32>
    %3 = vector.shape_cast %2 : vector<2x8xf32> to vector<2x8x1xf32>
    %cst_4 = arith.constant 0.000000e+00 : f32
    %4 = vector.broadcast %cst_4 : f32 to vector<2x8x1xf32>
    %5 = arith.cmpf one, %3, %4 : vector<2x8x1xf32>
    %cst_5 = arith.constant 1.000000e+00 : f32
    %6 = vector.broadcast %cst_5 : f32 to vector<2x8x1xf32>
    %7 = arith.select %5, %3, %6 : vector<2x8x1xi1>, vector<2x8x1xf32>
    %8 = math.rsqrt %7 : vector<2x8x1xf32>
    "tpu.trace_start"() <{level = 10 : i32, message = "bnm,bmk->bnk"}> : () -> ()
    %cst_6 = arith.constant dense<0.000000e+00> : vector<2x8x1xf32>
    %9 = tpu.matmul %1, %8, %cst_6 {dimension_numbers = #tpu.dot_dimension_numbers<[2], [1], [1], [2], [0, 0, 0, 1, 1, 2], [0], [0]>} : vector<2x8x8xf32>, vector<2x8x1xf32>, vector<2x8x1xf32> -> vector<2x8x1xf32>
    "tpu.trace_stop"() : () -> ()
    %10 = arith.mulf %8, %9 : vector<2x8x1xf32>
    %11 = vector.broadcast %0 : f32 to vector<2x8x1xf32>
    %12 = arith.addf %11, %10 : vector<2x8x1xf32>
    %c0_7 = arith.constant 0 : index
    %c0_8 = arith.constant 0 : index
    %13 = vector.load %arg5[%c0_7, %c0_8] : memref<1x4xf32, #tpu.memory_space<vmem>>, vector<1x4xf32>
    %14 = vector.shape_cast %13 : vector<1x4xf32> to vector<1x1x4xf32>
    %15 = vector.broadcast %12 : vector<2x8x1xf32> to vector<2x8x4xf32>
    %16 = vector.broadcast %14 : vector<1x1x4xf32> to vector<2x8x4xf32>
    %17 = arith.mulf %15, %16 : vector<2x8x4xf32>
    %c0_9 = arith.constant 0 : index
    %c0_10 = arith.constant 0 : index
    %18 = vector.load %arg6[%c0_9, %c0_10] : memref<1x4xf32, #tpu.memory_space<vmem>>, vector<1x4xf32>
    %19 = vector.shape_cast %18 : vector<1x4xf32> to vector<1x1x4xf32>
    %20 = vector.broadcast %19 : vector<1x1x4xf32> to vector<2x8x4xf32>
    %21 = arith.addf %17, %20 : vector<2x8x4xf32>
    %cst_11 = arith.constant 0.000000e+00 : f32
    %22 = vector.broadcast %cst_11 : f32 to vector<2x8x4xf32>
    %23 = arith.maximumf %21, %22 : vector<2x8x4xf32>
    %c0_12 = arith.constant 0 : index
    %c0_13 = arith.constant 0 : index
    %24 = vector.load %arg11[%c0_12, %c0_13] : memref<8x4xf32, #tpu.memory_space<vmem>>, vector<8x4xf32>
    %25 = vector.shape_cast %24 : vector<8x4xf32> to vector<1x8x4xf32>
    %26 = vector.broadcast %25 : vector<1x8x4xf32> to vector<2x8x4xf32>
    %27 = arith.mulf %23, %26 : vector<2x8x4xf32>
    %cst_14 = arith.constant dense<0.000000e+00> : vector<2x8xf32>
    %28 = vector.multi_reduction <add>, %27, %cst_14 [2] : vector<2x8x4xf32> to vector<2x8xf32>
    %29 = vector.shape_cast %28 : vector<2x8xf32> to vector<2x8x1xf32>
    %c0_15 = arith.constant 0 : index
    %c0_16 = arith.constant 0 : index
    %30 = vector.load %arg4[%c0_15, %c0_16] : memref<16x1xf32, #tpu.memory_space<vmem>>, vector<16x1xf32>
    %c0_17 = arith.constant 0 : index
    %c0_18 = arith.constant 0 : index
    %31 = vector.load %arg7[%c0_17, %c0_18] : memref<1x16xf32, #tpu.memory_space<vmem>>, vector<1x16xf32>
    %32 = vector.broadcast %30 : vector<16x1xf32> to vector<16x16xf32>
    %33 = vector.broadcast %31 : vector<1x16xf32> to vector<16x16xf32>
    %34 = arith.mulf %32, %33 : vector<16x16xf32>
    %c0_19 = arith.constant 0 : index
    %c0_20 = arith.constant 0 : index
    %35 = vector.load %arg8[%c0_19, %c0_20] : memref<1x16xf32, #tpu.memory_space<vmem>>, vector<1x16xf32>
    %36 = vector.broadcast %35 : vector<1x16xf32> to vector<16x16xf32>
    %37 = arith.addf %34, %36 : vector<16x16xf32>
    %cst_21 = arith.constant 0.000000e+00 : f32
    %38 = vector.broadcast %cst_21 : f32 to vector<16x16xf32>
    %39 = arith.maximumf %37, %38 : vector<16x16xf32>
    %c0_22 = arith.constant 0 : index
    %c0_23 = arith.constant 0 : index
    %40 = vector.load %arg9[%c0_22, %c0_23] : memref<16x8xf32, #tpu.memory_space<vmem>>, vector<16x8xf32>
    %cst_24 = arith.constant dense<0.000000e+00> : vector<16x8xf32>
    %41 = tpu.matmul %39, %40, %cst_24 {dimension_numbers = #tpu.dot_dimension_numbers<[1], [0], [0], [1], [0, 0, 1, 1], [], []>} : vector<16x16xf32>, vector<16x8xf32>, vector<16x8xf32> -> vector<16x8xf32>
    %c0_25 = arith.constant 0 : index
    %c0_26 = arith.constant 0 : index
    %42 = vector.load %arg10[%c0_25, %c0_26] : memref<1x8xf32, #tpu.memory_space<vmem>>, vector<1x8xf32>
    %43 = vector.broadcast %42 : vector<1x8xf32> to vector<16x8xf32>
    %44 = arith.addf %41, %43 : vector<16x8xf32>
    %cst_27 = arith.constant 0.000000e+00 : f32
    %45 = vector.broadcast %cst_27 : f32 to vector<16x8xf32>
    %46 = arith.maximumf %44, %45 : vector<16x8xf32>
    %47 = vector.shape_cast %46 : vector<16x8xf32> to vector<2x8x8xf32>
    %c0_28 = arith.constant 0 : index
    %c0_29 = arith.constant 0 : index
    %48 = vector.load %arg12[%c0_28, %c0_29] : memref<8x8xf32, #tpu.memory_space<vmem>>, vector<8x8xf32>
    %49 = vector.shape_cast %48 : vector<8x8xf32> to vector<1x8x8xf32>
    %50 = vector.broadcast %49 : vector<1x8x8xf32> to vector<2x8x8xf32>
    %51 = arith.mulf %47, %50 : vector<2x8x8xf32>
    %cst_30 = arith.constant dense<0.000000e+00> : vector<2x8xf32>
    %52 = vector.multi_reduction <add>, %51, %cst_30 [2] : vector<2x8x8xf32> to vector<2x8xf32>
    %53 = vector.shape_cast %52 : vector<2x8xf32> to vector<2x8x1xf32>
    %54 = arith.addf %29, %53 : vector<2x8x1xf32>
    %cst_31 = arith.constant dense<0.000000e+00> : vector<2x1xf32>
    %55 = vector.multi_reduction <add>, %54, %cst_31 [1] : vector<2x8x1xf32> to vector<2x1xf32>
    %c0_32 = arith.constant 0 : index
    %c0_33 = arith.constant 0 : index
    %56 = memref.load %arg2[%c0_32, %c0_33] : memref<1x1xf32, #tpu.memory_space<smem>>
    %57 = vector.broadcast %56 : f32 to vector<2x1xf32>
    %58 = arith.addf %55, %57 : vector<2x1xf32>
    %c0_34 = arith.constant 0 : index
    %c0_35 = arith.constant 0 : index
    %59 = vector.load %arg13[%c0_34, %c0_35] : memref<2x1xf32, #tpu.memory_space<vmem>>, vector<2x1xf32>
    tpu.vector_store %arg13[%c0_34, %c0_35], %58 {strides = array<i32>} : memref<2x1xf32, #tpu.memory_space<vmem>>, vector<2x1xf32>,
    return
  }
  func.func @transform_0(%arg0: i32) -> (i32, i32) {
    %c0_i32 = arith.constant 0 : i32
    %c0_i32_0 = arith.constant 0 : i32
    %c0_i32_1 = arith.constant 0 : i32
    return %c0_i32, %c0_i32_0 : i32, i32
  }
  func.func @transform_1(%arg0: i32) -> (i32, i32) {
    %c0_i32 = arith.constant 0 : i32
    %c0_i32_0 = arith.constant 0 : i32
    %c0_i32_1 = arith.constant 0 : i32
    return %c0_i32, %c0_i32_0 : i32, i32
  }
  func.func @transform_2(%arg0: i32) -> (i32, i32, i32) {
    %c0_i32 = arith.constant 0 : i32
    %c0_i32_0 = arith.constant 0 : i32
    %c0_i32_1 = arith.constant 0 : i32
    return %arg0, %c0_i32, %c0_i32_0 : i32, i32, i32
  }
  func.func @transform_3(%arg0: i32) -> (i32, i32) {
    %c0_i32 = arith.constant 0 : i32
    %c0_i32_0 = arith.constant 0 : i32
    return %arg0, %c0_i32 : i32, i32
  }
  func.func @transform_4(%arg0: i32) -> (i32, i32) {
    %c0_i32 = arith.constant 0 : i32
    %c0_i32_0 = arith.constant 0 : i32
    %c0_i32_1 = arith.constant 0 : i32
    return %c0_i32, %c0_i32_0 : i32, i32
  }
  func.func @transform_5(%arg0: i32) -> (i32, i32) {
    %c0_i32 = arith.constant 0 : i32
    %c0_i32_0 = arith.constant 0 : i32
    %c0_i32_1 = arith.constant 0 : i32
    return %c0_i32, %c0_i32_0 : i32, i32
  }
  func.func @transform_6(%arg0: i32) -> (i32, i32) {
    %c0_i32 = arith.constant 0 : i32
    %c0_i32_0 = arith.constant 0 : i32
    %c0_i32_1 = arith.constant 0 : i32
    return %c0_i32, %c0_i32_0 : i32, i32
  }
  func.func @transform_7(%arg0: i32) -> (i32, i32) {
    %c0_i32 = arith.constant 0 : i32
    %c0_i32_0 = arith.constant 0 : i32
    %c0_i32_1 = arith.constant 0 : i32
    return %c0_i32, %c0_i32_0 : i32, i32
  }
  func.func @transform_8(%arg0: i32) -> (i32, i32) {
    %c0_i32 = arith.constant 0 : i32
    %c0_i32_0 = arith.constant 0 : i32
    %c0_i32_1 = arith.constant 0 : i32
    return %c0_i32, %c0_i32_0 : i32, i32
  }
  func.func @transform_9(%arg0: i32) -> (i32, i32) {
    %c0_i32 = arith.constant 0 : i32
    %c0_i32_0 = arith.constant 0 : i32
    %c0_i32_1 = arith.constant 0 : i32
    return %c0_i32, %c0_i32_0 : i32, i32
  }
  func.func @transform_10(%arg0: i32) -> (i32, i32) {
    %c0_i32 = arith.constant 0 : i32
    %c0_i32_0 = arith.constant 0 : i32
    %c0_i32_1 = arith.constant 0 : i32
    return %c0_i32, %c0_i32_0 : i32, i32
  }
  func.func @transform_11(%arg0: i32) -> (i32, i32) {
    %c0_i32 = arith.constant 0 : i32
    %c0_i32_0 = arith.constant 0 : i32
    %c0_i32_1 = arith.constant 0 : i32
    return %c0_i32, %c0_i32_0 : i32, i32
  }
  func.func @transform_12(%arg0: i32) -> (i32, i32) {
    %c0_i32 = arith.constant 0 : i32
    %c0_i32_0 = arith.constant 0 : i32
    return %arg0, %c0_i32 : i32, i32
  }
}

</mosaic_0001>

<bundles_post_ra>
// kernel: tpu_custom_call.1
= control target key start
LH: loop header
LB: loop body
LE: loop exit
PB: predicated region body
PF: predicated region fallthrough
CT: control target
= control target key end

     0   :  { %vm46_vm0 = vcmask 64512   ;;  %v456_v4 = vmov 0   ;;  %v457_v6 = vmov 0.0   ;;  %vm458_vm1 = vmmov 0   ;;  %s578_s2 = inlined_call_operand.vmem [shape: f32[2,8,8], index: 2, kind: input, shape index: {}]   ;;  %s579_s3 = inlined_call_operand.vmem [shape: f32[16,1], index: 3, kind: input, shape index: {}]   ;;  %s580_s6 = inlined_call_operand.vmem [shape: f32[1,16], index: 6, kind: input, shape index: {}]   ;;  %s581_s7 = inlined_call_operand.vmem [shape: f32[1,16], index: 7, kind: input, shape index: {}]   ;;  %s582_s8 = inlined_call_operand.vmem [shape: f32[16,8], index: 8, kind: input, shape index: {}]   ;;  %s583_s0 = inlined_call_operand.<no memory space> [shape: f32[1,1], index: 0, kind: input, shape index: {}]   ;;  %s584_s9 = inlined_call_operand.vmem [shape: f32[1,8], index: 9, kind: input, shape index: {}]   ;;  %s585_s11 = inlined_call_operand.vmem [shape: f32[8,8], index: 11, kind: input, shape index: {}]   ;;  %s586_s4 = inlined_call_operand.vmem [shape: f32[1,4], index: 4, kind: input, shape index: {}]   ;;  %s587_s5 = inlined_call_operand.vmem [shape: f32[1,4], index: 5, kind: input, shape index: {}]   ;;  %s588_s10 = inlined_call_operand.vmem [shape: f32[8,4], index: 10, kind: input, shape index: {}]   ;;  %s589_s1 = inlined_call_operand.<no memory space> [shape: f32[1,1], index: 1, kind: input, shape index: {}]   ;;  %s590_s12 = inlined_call_operand.vmem [shape: f32[2,1], index: 12, kind: output, shape index: {}]  }
   0x1   :  { %v44_v0 = vld [vmem:[%s578_s2] sm:$0xff]  ;;  %v45_v1 = vld [vmem:[%s578_s2 + $0x8] sm:$0xff]  ;;  %450 = vset.pattern.permute.xlu1 %v456_v4  ;;  %430 = vmatprep.subr.mxu0 %v457_v6  ;;  %vm291_vm4 = vcmask 130048   ;;  %v207_v27 = vstv %s583_s0  ;;  %vm243_vm5 = vcmask 31744   ;;  %vm404_vm6 = vcmask 1041409  }
   0x2   :  { %v47_v2 = vsel %vm46_vm0, %v44_v0, 0.0  ;;  %v50_v3 = vsel %vm46_vm0, %v45_v1, 0.0  ;;  %v250_v5 = vld [vmem:[%s579_s3] sm:$0xff]  ;;  %435 = vmatprep.subr.mxu1 %v457_v6  ;;  %v251_v7 = vld [vmem:[%s579_s3 + $0x8] sm:$0xff]  ;;  %451 = vset.pattern.permute.xlu0 %v456_v4  ;;  %vm407_vm7 = vcmask 1024  }
   0x3   :  { %48 = vadd.xlane.f32.xlu0 %v47_v2  ;;  %255 = vperm.xlu1 %450, %v250_v5   ;;  %v417_v11 = vld [vmem:[%s580_s6] ss:$0 sm:$0xff]  ;;  %v283_v21 = vld [vmem:[%s582_s8 + $0x8] sm:$0xff] }
   0x4   :  { %432 = vmatprep.mubr.msk.f32.mxu0 %vm458_vm1, %v457_v6  ;;  %437 = vmatprep.mubr.msk.f32.mxu1 %vm458_vm1, %v457_v6  ;;  %v418_v15 = vld [vmem:[%s581_s7] ss:$0 sm:$0xff] }
   0x5   :  { %v282_v23 = vld [vmem:[%s582_s8] sm:$0xff] }
   0x6   :  { %v419_v33 = vld [vmem:[%s584_s9] ss:$0 sm:$0xff] }
   0x7   :  { %51 = vadd.xlane.f32.xlu0 %v50_v3  ;;  %260 = vperm.xlu1 %450, %v251_v7   ;;  %v375_v39 = vld [vmem:[%s585_s11] sm:$0xff] }
   0x8   :  { %v415_v46 = vld [vmem:[%s586_s4] ss:$0 sm:$0xff] }
   0x9   :  { %v416_v47 = vld [vmem:[%s587_s5] ss:$0 sm:$0xff] }
   0xa   :  { %v240_v52 = vld [vmem:[%s588_s10] sm:$0xff] }
  0x7e   :  { %v256_v12 = vpop.permute.xlu1 %255 }
  0x7f   :  { %v269_v14 = vmul.f32 %v417_v11, %v256_v12 }
  0x81   :  { %v278_v18 = vadd.f32 %v418_v15, %v269_v14 }
  0x82   :  { %v261_v16 = vpop.permute.xlu1 %260 }
  0x83   :  { %v270_v17 = vmul.f32 %v417_v11, %v261_v16  ;;  %v280_v20 = vmax.f32 %v278_v18, 0.0 }
  0x85   :  { %v279_v19 = vadd.f32 %v418_v15, %v270_v17  ;;  %v399_v15 = vstv %s589_s1 }
  0x87   :  { %v281_v24 = vmax.f32 %v279_v19, 0.0 }
  0x8c   :  { %v49_v8 = vpop.xlane.xlu0 %48 }
  0x8d   :  { %vm53_vm2 = vcmp.ne.f32.partialorder %v49_v8, 0.0 }
  0x8e   :  { %v55_v9 = vsel %vm53_vm2, %v49_v8, 1.0 }
  0x8f   :  { %452 = vrsqrt.f32 %v55_v9 }
  0x90   :  { %v52_v10 = vpop.xlane.xlu0 %51 }
  0x91   :  { %vm54_vm3 = vcmp.ne.f32.partialorder %v52_v10, 0.0 }
  0x92   :  { %v56_v13 = vsel %vm54_vm3, %v52_v10, 1.0 }
  0x93   :  { %454 = vrsqrt.f32 %v56_v13 }
  0x9c   :  { %v453_v22 = vpop.eup %452 }
  0x9d   :  { %431 = vmatpush3.msra.mxu0 %v453_v22 }
  0x9e   :  { %433 = vmatmul.mubr.msk.f32.vlgmr.msra.gmra.mxu0 %vm46_vm0, %v44_v0  ;;  %440 = vmatprep.subr.mxu0 %v283_v21 }
  0x9f   :  { %441 = vmatpush3.msra.mxu0 %v283_v21  ;;  %444 = vmatprep.mubr.msk.f32.mxu0 %vm291_vm4, %v280_v20 }
  0xa0   :  { %v455_v25 = vpop.eup %454  ;;  %442 = vmatprep.subr.mxu0 %v282_v23 }
  0xa1   :  { %436 = vmatpush3.msra.mxu1 %v455_v25  ;;  %443 = vmatpush3.msra.mxu0 %v282_v23 }
  0xa2   :  { %438 = vmatmul.mubr.msk.f32.vlgmr.msra.gmra.mxu1 %vm46_vm0, %v45_v1  ;;  %445 = vmatmul.mubr.msk.f32.vlgmr.msra.gmra.mxu0 %vm291_vm4, %v281_v24 }
 0x15e   :  { %v128_v26 = vpop.f32.mrf.mxu0 }
 0x15f   :  { %v205_v28 = vmul.f32 %v453_v22, %v128_v26 }
 0x160   :  { %v434_v29 = vpop.f32.mrf.mxu0 }
 0x161   :  { %v208_v30 = vadd.f32 %v207_v27, %v205_v28 }
 0x162   :  { %v201_v31 = vpop.f32.mrf.mxu1  ;;  %v446_v32 = vpop.f32.mrf.mxu0 }
 0x163   :  { %v206_v34 = vmul.f32 %v455_v25, %v201_v31  ;;  %213 = vperm.xlu0 %451, %v208_v30   ;;  %v370_v35 = vadd.f32 %v446_v32, %v419_v33 }
 0x164   :  { %v439_v36 = vpop.f32.mrf.mxu1  ;;  %v364_v41 = vpop.f32.mrf.mxu0 }
 0x165   :  { %v209_v37 = vadd.f32 %v207_v27, %v206_v34  ;;  %v374_v38 = vmax.f32 %v370_v35, 0.0  ;;  %v365_v42 = vadd.f32 %v419_v33, %v364_v41 }
 0x167   :  { %218 = vperm.xlu1 %450, %v209_v37   ;;  %v377_v40 = vmul.f32 %v375_v39, %v374_v38  ;;  %v373_v43 = vmax.f32 %v365_v42, 0.0 }
 0x169   :  { %v376_v44 = vmul.f32 %v375_v39, %v373_v43  ;;  %v381_v61 = vsel %vm46_vm0, %v377_v40, 0.0 }
 0x16b   :  { %v378_v45 = vsel %vm46_vm0, %v376_v44, 0.0 }
 0x182   :  { %379 = vadd.xlane.f32.xlu0 %v378_v45 }
 0x1de   :  { %v214_v48 = vpop.permute.xlu0 %213 }
 0x1df   :  { %v227_v49 = vmul.f32 %v415_v46, %v214_v48 }
 0x1e1   :  { %v236_v50 = vadd.f32 %v416_v47, %v227_v49 }
 0x1e2   :  { %v219_v51 = vpop.permute.xlu1 %218 }
 0x1e3   :  { %v238_v53 = vmax.f32 %v236_v50, 0.0  ;;  %v228_v54 = vmul.f32 %v415_v46, %v219_v51 }
 0x1e5   :  { %v237_v55 = vadd.f32 %v416_v47, %v228_v54  ;;  %v241_v56 = vmul.f32 %v240_v52, %v238_v53 }
 0x1e7   :  { %v239_v57 = vmax.f32 %v237_v55, 0.0  ;;  %v244_v58 = vsel %vm243_vm5, %v241_v56, 0.0 }
 0x1e8   :  { %245 = vadd.xlane.f32.xlu1 %v244_v58 }
 0x1e9   :  { %v242_v59 = vmul.f32 %v240_v52, %v239_v57 }
 0x1eb   :  { %v247_v60 = vsel %vm243_vm5, %v242_v59, 0.0 }
 0x1ec   :  { %248 = vadd.xlane.f32.xlu1 %v247_v60 }
 0x1f0   :  { %382 = vadd.xlane.f32.xlu1 %v381_v61 }
 0x20b   :  { %v380_v62 = vpop.xlane.xlu0 %379 }
 0x271   :  { %v246_v63 = vpop.xlane.xlu1 %245 }
 0x272   :  { %v384_v0 = vadd.f32 %v380_v62, %v246_v63 }
 0x274   :  { %v386_v1 = vrot.slane %v384_v0, 4 }
 0x275   :  { %v249_v2 = vpop.xlane.xlu1 %248 }
 0x276   :  { %v387_v3 = vadd.f32 %v386_v1, %v384_v0 }
 0x278   :  { %v388_v4 = vrot.slane %v387_v3, 2 }
 0x279   :  { %v383_v5 = vpop.xlane.xlu1 %382 }
 0x27a   :  { %v385_v6 = vadd.f32 %v383_v5, %v249_v2  ;;  %v389_v7 = vadd.f32 %v388_v4, %v387_v3 }
 0x27c   :  { %v392_v8 = vrot.slane %v385_v6, 4  ;;  %v390_v10 = vrot.slane %v389_v7, 1 }
 0x27e   :  { %v393_v9 = vadd.f32 %v392_v8, %v385_v6  ;;  %v391_v13 = vadd.f32 %v390_v10, %v389_v7 }
 0x280   :  { %v394_v11 = vrot.slane %v393_v9, 2  ;;  %v400_v17 = vadd.f32 %v399_v15, %v391_v13 }
 0x282   :  { %v395_v12 = vadd.f32 %v394_v11, %v393_v9 }
 0x284   :  { %v396_v14 = vrot.slane %v395_v12, 1 }
 0x286   :  { %v397_v16 = vadd.f32 %v396_v14, %v395_v12 }
 0x288   :  { %v401_v18 = vadd.f32 %v399_v15, %v397_v16 }
 0x28a   :  { %v405_v19 = vsel %vm404_vm6, %v401_v18, %v400_v17 }
 0x28b   :  { %408 = vst.msk [vmem:[%s590_s12] sm:$0x3] %vm407_vm7, %v405_v19 }

</bundles_post_ra>
